<compile_context>
chip_gen: v6e
topology: v6e:2x2x1
jax: 0.10.0
libtpu: 0.0.40
codegen_flags: <defaults>
</compile_context>

<pallas_src>
import functools
import math

import jax
import jax.numpy as jnp
from jax import lax
from jax.experimental import pallas as pl
from jax.experimental.pallas import tpu as pltpu

_FUSED = 128  # 2 * hidden(64): actor occupies lanes [0:64], critic lanes [64:128]


def _round_up(x, m):
    return (x + m - 1) // m * m


# --------------------------------------------------------------------------- #
# Kernel
# --------------------------------------------------------------------------- #
def _fused_actor_critic_kernel(state_ref, action_ref, w_ref, aux_ref, out_ref,
                               *, s_pad):
    x = state_ref[...]                                   # (Bt, S_pad)  f32
    act = action_ref[...]                                # (Bt, 128)    f32 (zero past A)
    aux = aux_ref[...]                                   # (4, 128): b1, b2, b3, inv_var

    w1 = w_ref[0:s_pad, :]                               # (S_pad, 128)
    w2 = w_ref[s_pad:s_pad + _FUSED, :]                  # (128, 128)
    w3 = w_ref[s_pad + _FUSED:s_pad + 2 * _FUSED, :]     # (128, 128)

    b1 = aux[0:1, :]
    b2 = aux[1:2, :]
    b3 = aux[2:3, :]
    inv_var = aux[3:4, :]                                # zeros in lanes >= A

    # Fused actor||critic MLP: 3 lane-full 128-wide matmuls.
    h = jnp.tanh(jnp.dot(x, w1, preferred_element_type=jnp.float32) + b1)
    h = jnp.tanh(jnp.dot(h, w2, preferred_element_type=jnp.float32) + b2)
    z3 = jnp.dot(h, w3, preferred_element_type=jnp.float32) + b3        # (Bt, 128)

    # action_mean = tanh(z3) on lanes [0:A]; lanes >= A are masked out of the
    # quadratic form by inv_var == 0, so tanh over the full slab is harmless
    # (and keeps everything lane-dense / unmasked).
    diff = act - jnp.tanh(z3)
    quad = jnp.sum(diff * diff * inv_var, axis=-1, keepdims=True)       # (Bt, 1)

    lane = lax.broadcasted_iota(jnp.int32, z3.shape, 1)
    # lane 0 <- -0.5 * quad ; all other lanes keep z3 (critic value at lane A).
    out_ref[...] = jnp.where(lane == 0, -0.5 * quad, z3)


# --------------------------------------------------------------------------- #
# Parameter packing (block-diagonal fusion of actor + critic)
# --------------------------------------------------------------------------- #
def _pack_params(params, state_dim, action_dim, s_pad):
    f32 = jnp.float32
    H = params["aw1"].shape[-1]                          # 64
    assert 2 * H == _FUSED, "fused width must be 2 * hidden"
    A = action_dim

    w1 = jnp.zeros((s_pad, _FUSED), f32)
    w1 = w1.at[:state_dim, :H].set(params["aw1"].astype(f32))
    w1 = w1.at[:state_dim, H:].set(params["cw1"].astype(f32))

    w2 = jnp.zeros((_FUSED, _FUSED), f32)
    w2 = w2.at[:H, :H].set(params["aw2"].astype(f32))
    w2 = w2.at[H:, H:].set(params["cw2"].astype(f32))

    w3 = jnp.zeros((_FUSED, _FUSED), f32)
    w3 = w3.at[:H, :A].set(params["aw3"].astype(f32))
    w3 = w3.at[H:, A:A + 1].set(params["cw3"].astype(f32))

    b1 = jnp.concatenate([params["ab1"], params["cb1"]]).astype(f32)     # (128,)
    b2 = jnp.concatenate([params["ab2"], params["cb2"]]).astype(f32)     # (128,)
    b3 = jnp.zeros((_FUSED,), f32)
    b3 = b3.at[:A].set(params["ab3"].astype(f32))
    b3 = b3.at[A].set(params["cb3"].astype(f32)[0])

    w_packed = jnp.concatenate([w1, w2, w3], axis=0)                     # (S_pad+256, 128)
    return w_packed, b1, b2, b3


# --------------------------------------------------------------------------- #
# Wrapper
# --------------------------------------------------------------------------- #
def actor_critic_evaluate(state, action, params, action_var, *, block_b=256):
    """Pallas implementation of ActorCritic.evaluate (continuous actions).

    Returns (action_logprobs (B,), state_values (B,1), dist_entropy (B,)).
    """
    B, S = state.shape
    A = action.shape[-1]
    assert A + 1 <= _FUSED

    f32 = jnp.float32
    s_pad = _round_up(S, 8)

    # Batch tiling: Bt is a multiple of 8, capped at block_b (default 256 keeps
    # double-buffered (Bt,128) activations tiny relative to VMEM on all chips).
    bt = _round_up(min(block_b, max(B, 8)), 8)
    b_pad = _round_up(B, bt)
    n_blocks = b_pad // bt

    var = action_var.astype(f32)
    w_packed, b1, b2, b3 = _pack_params(params, S, A, s_pad)
    inv_var = jnp.zeros((_FUSED,), f32).at[:A].set(1.0 / var)
    aux = jnp.stack([b1, b2, b3, inv_var])                               # (4, 128)

    state_pad = jnp.zeros((b_pad, s_pad), f32).at[:B, :S].set(state.astype(f32))
    action_pad = jnp.zeros((b_pad, _FUSED), f32).at[:B, :A].set(action.astype(f32))

    kernel = functools.partial(_fused_actor_critic_kernel, s_pad=s_pad)

    out = pl.pallas_call(
        kernel,
        out_shape=jax.ShapeDtypeStruct((b_pad, _FUSED), f32),
        grid_spec=pltpu.PrefetchScalarGridSpec(
            num_scalar_prefetch=0,
            grid=(n_blocks,),
            in_specs=[
                pl.BlockSpec((bt, s_pad), lambda i: (i, 0)),     # state tile
                pl.BlockSpec((bt, _FUSED), lambda i: (i, 0)),    # action tile
                pl.BlockSpec(w_packed.shape, lambda i: (0, 0)),  # weights (resident)
                pl.BlockSpec(aux.shape, lambda i: (0, 0)),       # biases + inv_var
            ],
            out_specs=pl.BlockSpec((bt, _FUSED), lambda i: (i, 0)),
        ),
        compiler_params=pltpu.CompilerParams(
            dimension_semantics=("parallel",)),
    )(state_pad, action_pad, w_packed, aux)

    # Constants hoisted out of the kernel (depend only on action_var).
    log2pi = math.log(2.0 * math.pi)
    logdet = jnp.sum(jnp.log(var))
    lp_const = -0.5 * (logdet + A * log2pi)
    ent_const = 0.5 * (logdet + A * (1.0 + log2pi))

    logprob = out[:B, 0] + lp_const                      # (B,)
    value = out[:B, A:A + 1]                             # (B, 1)
    entropy = jnp.broadcast_to(ent_const, (B,))          # (B,)  (constant-cov MVN)
    return logprob, value, entropy


# --------------------------------------------------------------------------- #
# Parameters / reference
# --------------------------------------------------------------------------- #
def init_params(key, state_dim, action_dim, hidden=64):
    """Deterministic synthetic parameters (PyTorch Linear shapes, pre-transposed)."""
    ks = jax.random.split(key, 12)

    def lin(kw, kb, fan_in, fan_out):
        bound = 1.0 / math.sqrt(fan_in)
        w = jax.random.uniform(kw, (fan_in, fan_out), jnp.float32, -bound, bound)
        b = jax.random.uniform(kb, (fan_out,), jnp.float32, -bound, bound)
        return w, b

    aw1, ab1 = lin(ks[0], ks[1], state_dim, hidden)
    aw2, ab2 = lin(ks[2], ks[3], hidden, hidden)
    aw3, ab3 = lin(ks[4], ks[5], hidden, action_dim)
    cw1, cb1 = lin(ks[6], ks[7], state_dim, hidden)
    cw2, cb2 = lin(ks[8], ks[9], hidden, hidden)
    cw3, cb3 = lin(ks[10], ks[11], hidden, 1)
    return dict(aw1=aw1, ab1=ab1, aw2=aw2, ab2=ab2, aw3=aw3, ab3=ab3,
                cw1=cw1, cb1=cb1, cw2=cw2, cb2=cb2, cw3=cw3, cb3=cb3)


def _reference(state, action, p, var):
    """Pure-JAX reference mirroring torch semantics (for sanity check)."""
    h = jnp.tanh(state @ p["aw1"] + p["ab1"])
    h = jnp.tanh(h @ p["aw2"] + p["ab2"])
    mean = jnp.tanh(h @ p["aw3"] + p["ab3"])
    c = jnp.tanh(state @ p["cw1"] + p["cb1"])
    c = jnp.tanh(c @ p["cw2"] + p["cb2"])
    v = c @ p["cw3"] + p["cb3"]
    k = mean.shape[-1]
    diff = action - mean
    quad = jnp.sum(diff * diff / var, axis=-1)
    logdet = jnp.sum(jnp.log(var))
    lp = -0.5 * (quad + logdet + k * math.log(2 * math.pi))
    ent = jnp.full((state.shape[0],),
                   0.5 * (logdet + k * (1.0 + math.log(2 * math.pi))))
    return lp, v, ent


if __name__ == "__main__":
    B, STATE_DIM, ACTION_DIM = 8, 32, 4
    ACTION_STD_INIT = 0.6

    key = jax.random.PRNGKey(0)
    k_state, k_action, k_params = jax.random.split(key, 3)

    state = jax.random.normal(k_state, (B, STATE_DIM), jnp.float32)
    action = jax.random.normal(k_action, (B, ACTION_DIM), jnp.float32)
    params = init_params(k_params, STATE_DIM, ACTION_DIM)
    action_var = jnp.full((ACTION_DIM,), ACTION_STD_INIT * ACTION_STD_INIT,
                          jnp.float32)

    evaluate = jax.jit(actor_critic_evaluate)
    logprob, value, entropy = evaluate(state, action, params, action_var)
    jax.block_until_ready((logprob, value, entropy))

    # correctness check against pure-JAX reference
    lp_ref, v_ref, ent_ref = _reference(state, action, params, action_var)
    assert logprob.shape == (B,) and value.shape == (B, 1) and entropy.shape == (B,)
    assert jnp.allclose(logprob, lp_ref, atol=1e-4, rtol=1e-4)
    assert jnp.allclose(value, v_ref, atol=1e-4, rtol=1e-4)
    assert jnp.allclose(entropy, ent_ref, atol=1e-4, rtol=1e-4)

    print("KERNEL_OK")
</pallas_src>

<mosaic_0001>
module attributes {stable_mosaic.version = 11 : i64} {
  func.func @_fused_actor_critic_kernel(%arg0: i32, %arg1: memref<8x32xf32, #tpu.memory_space<vmem>>, %arg2: memref<8x128xf32, #tpu.memory_space<vmem>>, %arg3: memref<288x128xf32, #tpu.memory_space<vmem>>, %arg4: memref<4x128xf32, #tpu.memory_space<vmem>>, %arg5: memref<8x128xf32, #tpu.memory_space<vmem>>) attributes {dimension_semantics = [#tpu.dimension_semantics<parallel>], iteration_bounds = array<i64: 1>, scalar_prefetch = 0 : i64, scratch_operands = 0 : i64, tpu.core_type = #tpu.core_type<tc>, window_params = [{transform_indices = @transform_0, window_bounds = array<i64: 8, 32>}, {transform_indices = @transform_1, window_bounds = array<i64: 8, 128>}, {pipeline_mode = #tpu.pipeline_mode<synchronous>, transform_indices = @transform_2, window_bounds = array<i64: 288, 128>}, {pipeline_mode = #tpu.pipeline_mode<synchronous>, transform_indices = @transform_3, window_bounds = array<i64: 4, 128>}, {transform_indices = @transform_4, window_bounds = array<i64: 8, 128>}]} {
    %c0 = arith.constant 0 : index
    %c0_0 = arith.constant 0 : index
    %0 = vector.load %arg1[%c0, %c0_0] : memref<8x32xf32, #tpu.memory_space<vmem>>, vector<8x32xf32>
    %c0_1 = arith.constant 0 : index
    %c0_2 = arith.constant 0 : index
    %1 = vector.load %arg2[%c0_1, %c0_2] : memref<8x128xf32, #tpu.memory_space<vmem>>, vector<8x128xf32>
    %c0_3 = arith.constant 0 : index
    %c0_4 = arith.constant 0 : index
    %2 = vector.load %arg4[%c0_3, %c0_4] : memref<4x128xf32, #tpu.memory_space<vmem>>, vector<4x128xf32>
    %c0_5 = arith.constant 0 : index
    %c0_6 = arith.constant 0 : index
    %3 = vector.load %arg3[%c0_5, %c0_6] : memref<288x128xf32, #tpu.memory_space<vmem>>, vector<32x128xf32>
    %c32 = arith.constant 32 : index
    %c0_7 = arith.constant 0 : index
    %4 = vector.load %arg3[%c32, %c0_7] : memref<288x128xf32, #tpu.memory_space<vmem>>, vector<128x128xf32>
    %c160 = arith.constant 160 : index
    %c0_8 = arith.constant 0 : index
    %5 = vector.load %arg3[%c160, %c0_8] : memref<288x128xf32, #tpu.memory_space<vmem>>, vector<128x128xf32>
    %6 = vector.extract_strided_slice %2 {offsets = [0, 0], sizes = [1, 128], strides = [1, 1]} : vector<4x128xf32> to vector<1x128xf32>
    %7 = vector.extract_strided_slice %2 {offsets = [1, 0], sizes = [1, 128], strides = [1, 1]} : vector<4x128xf32> to vector<1x128xf32>
    %8 = vector.extract_strided_slice %2 {offsets = [2, 0], sizes = [1, 128], strides = [1, 1]} : vector<4x128xf32> to vector<1x128xf32>
    %9 = vector.extract_strided_slice %2 {offsets = [3, 0], sizes = [1, 128], strides = [1, 1]} : vector<4x128xf32> to vector<1x128xf32>
    %cst = arith.constant dense<0.000000e+00> : vector<8x128xf32>
    %10 = tpu.matmul %0, %3, %cst {dimension_numbers = #tpu.dot_dimension_numbers<[1], [0], [0], [1], [0, 0, 1, 1], [], []>} : vector<8x32xf32>, vector<32x128xf32>, vector<8x128xf32> -> vector<8x128xf32>
    %11 = vector.broadcast %6 : vector<1x128xf32> to vector<8x128xf32>
    %12 = arith.addf %10, %11 : vector<8x128xf32>
    %13 = math.tanh %12 : vector<8x128xf32>
    %cst_9 = arith.constant dense<0.000000e+00> : vector<8x128xf32>
    %14 = tpu.matmul %13, %4, %cst_9 {dimension_numbers = #tpu.dot_dimension_numbers<[1], [0], [0], [1], [0, 0, 1, 1], [], []>} : vector<8x128xf32>, vector<128x128xf32>, vector<8x128xf32> -> vector<8x128xf32>
    %15 = vector.broadcast %7 : vector<1x128xf32> to vector<8x128xf32>
    %16 = arith.addf %14, %15 : vector<8x128xf32>
    %17 = math.tanh %16 : vector<8x128xf32>
    %cst_10 = arith.constant dense<0.000000e+00> : vector<8x128xf32>
    %18 = tpu.matmul %17, %5, %cst_10 {dimension_numbers = #tpu.dot_dimension_numbers<[1], [0], [0], [1], [0, 0, 1, 1], [], []>} : vector<8x128xf32>, vector<128x128xf32>, vector<8x128xf32> -> vector<8x128xf32>
    %19 = vector.broadcast %8 : vector<1x128xf32> to vector<8x128xf32>
    %20 = arith.addf %18, %19 : vector<8x128xf32>
    %21 = math.tanh %20 : vector<8x128xf32>
    %22 = arith.subf %1, %21 : vector<8x128xf32>
    %23 = arith.mulf %22, %22 : vector<8x128xf32>
    %24 = vector.broadcast %9 : vector<1x128xf32> to vector<8x128xf32>
    %25 = arith.mulf %23, %24 : vector<8x128xf32>
    %cst_11 = arith.constant dense<0.000000e+00> : vector<8xf32>
    %26 = vector.multi_reduction <add>, %25, %cst_11 [1] : vector<8x128xf32> to vector<8xf32>
    %27 = vector.shape_cast %26 : vector<8xf32> to vector<8x1xf32>
    %28 = tpu.iota {dimensions = array<i32: 1>} : vector<8x128xi32>
    %c0_i32 = arith.constant 0 : i32
    %29 = vector.broadcast %c0_i32 : i32 to vector<8x128xi32>
    %30 = arith.cmpi eq, %28, %29 : vector<8x128xi32>
    %cst_12 = arith.constant -5.000000e-01 : f32
    %31 = vector.broadcast %cst_12 : f32 to vector<8x1xf32>
    %32 = arith.mulf %31, %27 : vector<8x1xf32>
    %33 = vector.shape_cast %32 : vector<8x1xf32> to vector<8x1xf32>
    %34 = vector.broadcast %33 : vector<8x1xf32> to vector<8x128xf32>
    %35 = arith.select %30, %34, %20 : vector<8x128xi1>, vector<8x128xf32>
    %c0_13 = arith.constant 0 : index
    %c0_14 = arith.constant 0 : index
    %36 = vector.load %arg5[%c0_13, %c0_14] : memref<8x128xf32, #tpu.memory_space<vmem>>, vector<8x128xf32>
    tpu.vector_store %arg5[%c0_13, %c0_14], %35 {strides = array<i32>} : memref<8x128xf32, #tpu.memory_space<vmem>>, vector<8x128xf32>,
    return
  }
  func.func @transform_0(%arg0: i32) -> (i32, i32) {
    %c0_i32 = arith.constant 0 : i32
    %c0_i32_0 = arith.constant 0 : i32
    return %arg0, %c0_i32 : i32, i32
  }
  func.func @transform_1(%arg0: i32) -> (i32, i32) {
    %c0_i32 = arith.constant 0 : i32
    %c0_i32_0 = arith.constant 0 : i32
    return %arg0, %c0_i32 : i32, i32
  }
  func.func @transform_2(%arg0: i32) -> (i32, i32) {
    %c0_i32 = arith.constant 0 : i32
    %c0_i32_0 = arith.constant 0 : i32
    %c0_i32_1 = arith.constant 0 : i32
    return %c0_i32, %c0_i32_0 : i32, i32
  }
  func.func @transform_3(%arg0: i32) -> (i32, i32) {
    %c0_i32 = arith.constant 0 : i32
    %c0_i32_0 = arith.constant 0 : i32
    %c0_i32_1 = arith.constant 0 : i32
    return %c0_i32, %c0_i32_0 : i32, i32
  }
  func.func @transform_4(%arg0: i32) -> (i32, i32) {
    %c0_i32 = arith.constant 0 : i32
    %c0_i32_0 = arith.constant 0 : i32
    return %arg0, %c0_i32 : i32, i32
  }
}

</mosaic_0001>

<bundles_post_ra>
// kernel: actor_critic_evaluate.1
= control target key start
LH: loop header
LB: loop body
LE: loop exit
PB: predicated region body
PF: predicated region fallthrough
CT: control target
= control target key end

     0   :  { %v433_v0 = vmov 0.0   ;;  %vm434_vm0 = vmmov 0   ;;  %vm60_vm1 = vcmask 261120   ;;  %v56_v29 = vlaneseq  ;;  %s622_s2 = inlined_call_operand.vmem [shape: f32[288,128], index: 2, kind: input, shape index: {}]   ;;  %s623_s0 = inlined_call_operand.vmem [shape: f32[8,32], index: 0, kind: input, shape index: {}]   ;;  %s624_s3 = inlined_call_operand.vmem [shape: f32[4,128], index: 3, kind: input, shape index: {}]   ;;  %s625_s1 = inlined_call_operand.vmem [shape: f32[8,128], index: 1, kind: input, shape index: {}]   ;;  %s626_s4 = inlined_call_operand.vmem [shape: f32[8,128], index: 4, kind: output, shape index: {}]  }
   0x1   :  { %344 = vmatprep.subr.mxu0 %v433_v0  ;;  %v23_v1 = vld [vmem:[%s622_s2 + $0x18] sm:$0xff]  ;;  %v22_v2 = vld [vmem:[%s622_s2 + $0x10] sm:$0xff]  ;;  %352 = vmatprep.mubr.msk.f32.mxu0 %vm434_vm0, %v433_v0  ;;  %v21_v4 = vld [vmem:[%s622_s2 + $0x8] sm:$0xff] }
   0x2   :  { %345 = vmatpush3.msra.mxu0 %v23_v1  ;;  %355 = vmatprep.subr.mxu1 %v433_v0  ;;  %v39_v3 = vld [vmem:[%s622_s2 + $0x98] sm:$0xff]  ;;  %v38_v5 = vld [vmem:[%s622_s2 + $0x90] sm:$0xff]  ;;  %v37_v6 = vld [vmem:[%s622_s2 + $0x88] sm:$0xff]  ;;  %v57_v30 = vshrl.u32 %v56_v29, 7  ;;  %v295_v1 = vand.u32 127, %v56_v29 }
   0x3   :  { %346 = vmatprep.subr.mxu0 %v433_v0  ;;  %356 = vmatpush3.msra.mxu1 %v39_v3  ;;  %v20_v7 = vld [vmem:[%s622_s2] sm:$0xff]  ;;  %v35_v10 = vld [vmem:[%s622_s2 + $0x78] sm:$0xff]  ;;  %v34_v11 = vld [vmem:[%s622_s2 + $0x70] sm:$0xff] }
   0x4   :  { %347 = vmatpush3.msra.mxu0 %v22_v2  ;;  %357 = vmatprep.subr.mxu1 %v433_v0  ;;  %v17_v8 = vld [vmem:[%s623_s0] sm:$0xff]  ;;  %v33_v12 = vld [vmem:[%s622_s2 + $0x68] sm:$0xff]  ;;  %v31_v14 = vld [vmem:[%s622_s2 + $0x58] sm:$0xff]  ;;  %v58_v31 = vsub.s32 0, %v57_v30  ;;  %v137_v47 = vsub.s32 1, %v57_v30  ;;  %v212_v53 = vsub.s32 2, %v57_v30 }
   0x5   :  { %348 = vmatprep.subr.mxu0 %v433_v0  ;;  %358 = vmatpush3.msra.mxu1 %v38_v5  ;;  %v36_v9 = vld [vmem:[%s622_s2 + $0x80] sm:$0xff]  ;;  %v30_v15 = vld [vmem:[%s622_s2 + $0x50] sm:$0xff]  ;;  %v29_v16 = vld [vmem:[%s622_s2 + $0x48] sm:$0xff]  ;;  %v289_v58 = vsub.s32 3, %v57_v30  ;;  %vm296_vm2 = vcmp.eq.s32.totalorder %v295_v1, 0 }
   0x6   :  { %349 = vmatpush3.msra.mxu0 %v21_v4  ;;  %359 = vmatprep.subr.mxu1 %v433_v0  ;;  %v32_v13 = vld [vmem:[%s622_s2 + $0x60] sm:$0xff]  ;;  %v27_v18 = vld [vmem:[%s622_s2 + $0x38] sm:$0xff]  ;;  %v26_v19 = vld [vmem:[%s622_s2 + $0x30] sm:$0xff] }
   0x7   :  { %350 = vmatprep.subr.mxu0 %v433_v0  ;;  %360 = vmatpush3.msra.mxu1 %v37_v6  ;;  %v28_v17 = vld [vmem:[%s622_s2 + $0x40] sm:$0xff]  ;;  %v25_v20 = vld [vmem:[%s622_s2 + $0x28] sm:$0xff]  ;;  %v55_v22 = vld [vmem:[%s622_s2 + $0x118] sm:$0xff] }
   0x8   :  { %351 = vmatpush3.msra.mxu0 %v20_v7  ;;  %361 = vmatprep.subr.mxu1 %v433_v0  ;;  %v24_v21 = vld [vmem:[%s622_s2 + $0x20] sm:$0xff]  ;;  %v54_v23 = vld [vmem:[%s622_s2 + $0x110] sm:$0xff]  ;;  %v53_v24 = vld [vmem:[%s622_s2 + $0x108] sm:$0xff] }
   0x9   :  { %353 = vmatmul.mubr.msk.f32.vlgmr.msra.gmra.mxu0 %vm60_vm1, %v17_v8  ;;  %362 = vmatpush3.msra.mxu1 %v36_v9  ;;  %v52_v25 = vld [vmem:[%s622_s2 + $0x100] sm:$0xff]  ;;  %v51_v26 = vld [vmem:[%s622_s2 + $0xf8] sm:$0xff]  ;;  %v50_v27 = vld [vmem:[%s622_s2 + $0xf0] sm:$0xff] }
   0xa   :  { %363 = vmatprep.subr.mxu1 %v433_v0  ;;  %387 = vmatprep.mubr.msk.f32.mxu1 %vm434_vm0, %v433_v0  ;;  %v49_v28 = vld [vmem:[%s622_s2 + $0xe8] sm:$0xff]  ;;  %v19_v32 = vld [vmem:[%s624_s3] sm:$0xf]  ;;  %v47_v39 = vld [vmem:[%s622_s2 + $0xd8] sm:$0xff] }
   0xb   :  { %364 = vmatpush3.msra.mxu1 %v35_v10  ;;  %390 = vmatprep.subr.mxu0 %v433_v0  ;;  %v59_v33 = vrot.slane %v19_v32, %v58_v31  ;;  %v48_v38 = vld [vmem:[%s622_s2 + $0xe0] sm:$0xff]  ;;  %v46_v40 = vld [vmem:[%s622_s2 + $0xd0] sm:$0xff]  ;;  %v45_v41 = vld [vmem:[%s622_s2 + $0xc8] sm:$0xff]  ;;  %v138_v48 = vrot.slane %v19_v32, %v137_v47  ;;  %v213_v54 = vrot.slane %v19_v32, %v212_v53 }
   0xc   :  { %365 = vmatprep.subr.mxu1 %v433_v0  ;;  %422 = vmatprep.mubr.msk.f32.mxu0 %vm434_vm0, %v433_v0  ;;  %v44_v42 = vld [vmem:[%s622_s2 + $0xc0] sm:$0xff]  ;;  %v43_v43 = vld [vmem:[%s622_s2 + $0xb8] sm:$0xff]  ;;  %v42_v44 = vld [vmem:[%s622_s2 + $0xb0] sm:$0xff]  ;;  %v290_v62 = vrot.slane %v19_v32, %v289_v58 }
   0xd   :  { %366 = vmatpush3.msra.mxu1 %v34_v11  ;;  %391 = vmatpush3.msra.mxu0 %v55_v22  ;;  %v41_v45 = vld [vmem:[%s622_s2 + $0xa8] sm:$0xff]  ;;  %v40_v46 = vld [vmem:[%s622_s2 + $0xa0] sm:$0xff] }
   0xe   :  { %367 = vmatprep.subr.mxu1 %v433_v0  ;;  %392 = vmatprep.subr.mxu0 %v433_v0  ;;  %v18_v59 = vld [vmem:[%s625_s1] sm:$0xff] }
   0xf   :  { %368 = vmatpush3.msra.mxu1 %v33_v12  ;;  %393 = vmatpush3.msra.mxu0 %v54_v23 }
  0x10   :  { %369 = vmatprep.subr.mxu1 %v433_v0  ;;  %394 = vmatprep.subr.mxu0 %v433_v0 }
  0x11   :  { %370 = vmatpush3.msra.mxu1 %v32_v13  ;;  %395 = vmatpush3.msra.mxu0 %v53_v24 }
  0x12   :  { %371 = vmatprep.subr.mxu1 %v433_v0  ;;  %396 = vmatprep.subr.mxu0 %v433_v0 }
  0x13   :  { %372 = vmatpush3.msra.mxu1 %v31_v14  ;;  %397 = vmatpush3.msra.mxu0 %v52_v25 }
  0x14   :  { %373 = vmatprep.subr.mxu1 %v433_v0  ;;  %398 = vmatprep.subr.mxu0 %v433_v0 }
  0x15   :  { %374 = vmatpush3.msra.mxu1 %v30_v15  ;;  %399 = vmatpush3.msra.mxu0 %v51_v26 }
  0x16   :  { %375 = vmatprep.subr.mxu1 %v433_v0  ;;  %400 = vmatprep.subr.mxu0 %v433_v0 }
  0x17   :  { %376 = vmatpush3.msra.mxu1 %v29_v16  ;;  %401 = vmatpush3.msra.mxu0 %v50_v27 }
  0x18   :  { %377 = vmatprep.subr.mxu1 %v433_v0  ;;  %402 = vmatprep.subr.mxu0 %v433_v0 }
  0x19   :  { %378 = vmatpush3.msra.mxu1 %v28_v17  ;;  %403 = vmatpush3.msra.mxu0 %v49_v28 }
  0x1a   :  { %379 = vmatprep.subr.mxu1 %v433_v0  ;;  %404 = vmatprep.subr.mxu0 %v433_v0 }
  0x1b   :  { %380 = vmatpush3.msra.mxu1 %v27_v18  ;;  %405 = vmatpush3.msra.mxu0 %v48_v38 }
  0x1c   :  { %381 = vmatprep.subr.mxu1 %v433_v0  ;;  %406 = vmatprep.subr.mxu0 %v433_v0 }
  0x1d   :  { %382 = vmatpush3.msra.mxu1 %v26_v19  ;;  %407 = vmatpush3.msra.mxu0 %v47_v39 }
  0x1e   :  { %383 = vmatprep.subr.mxu1 %v433_v0  ;;  %408 = vmatprep.subr.mxu0 %v433_v0 }
  0x1f   :  { %384 = vmatpush3.msra.mxu1 %v25_v20  ;;  %409 = vmatpush3.msra.mxu0 %v46_v40 }
  0x20   :  { %385 = vmatprep.subr.mxu1 %v433_v0  ;;  %410 = vmatprep.subr.mxu0 %v433_v0 }
  0x21   :  { %386 = vmatpush3.msra.mxu1 %v24_v21  ;;  %411 = vmatpush3.msra.mxu0 %v45_v41 }
  0x22   :  { %412 = vmatprep.subr.mxu0 %v433_v0 }
  0x23   :  { %413 = vmatpush3.msra.mxu0 %v44_v42 }
  0x24   :  { %414 = vmatprep.subr.mxu0 %v433_v0 }
  0x25   :  { %415 = vmatpush3.msra.mxu0 %v43_v43 }
  0x26   :  { %416 = vmatprep.subr.mxu0 %v433_v0 }
  0x27   :  { %417 = vmatpush3.msra.mxu0 %v42_v44 }
  0x28   :  { %418 = vmatprep.subr.mxu0 %v433_v0 }
  0x29   :  { %419 = vmatpush3.msra.mxu0 %v41_v45 }
  0x2a   :  { %420 = vmatprep.subr.mxu0 %v433_v0 }
  0x2b   :  { %421 = vmatpush3.msra.mxu0 %v40_v46 }
  0xc9   :  { %v130_v34 = vpop.f32.mrf.mxu0 }
  0xca   :  { %v131_v35 = vadd.f32 %v130_v34, %v59_v33 }
  0xcb   :  { %v354_v36 = vpop.f32.mrf.mxu0 }
  0xcc   :  { %427 = vtanh.f32 %v131_v35 }
  0xd9   :  { %v428_v37 = vpop.eup %427 }
  0xda   :  { %388 = vmatmul.mubr.f32.vlgmr.msra.gmra.mxu1 %v428_v37 }
 0x19a   :  { %v205_v49 = vpop.f32.mrf.mxu1 }
 0x19b   :  { %v206_v50 = vadd.f32 %v205_v49, %v138_v48 }
 0x19c   :  { %v389_v51 = vpop.f32.mrf.mxu1 }
 0x19d   :  { %429 = vtanh.f32 %v206_v50 }
 0x1aa   :  { %v430_v52 = vpop.eup %429 }
 0x1ab   :  { %423 = vmatmul.mubr.f32.vlgmr.msra.gmra.mxu0 %v430_v52 }
 0x26b   :  { %v280_v55 = vpop.f32.mrf.mxu0 }
 0x26c   :  { %v281_v56 = vadd.f32 %v280_v55, %v213_v54 }
 0x26d   :  { %v424_v57 = vpop.f32.mrf.mxu0 }
 0x26e   :  { %431 = vtanh.f32 %v281_v56 }
 0x27b   :  { %v432_v60 = vpop.eup %431 }
 0x27c   :  { %v285_v61 = vsub.f32 %v18_v59, %v432_v60 }
 0x27e   :  { %v286_v63 = vmul.f32 %v285_v61, %v285_v61 }
 0x280   :  { %v291_v0 = vmul.f32 %v290_v62, %v286_v63 }
 0x282   :  { %292 = vadd.xlane.f32.xlu0 %v291_v0 }
 0x30b   :  { %v293_v2 = vpop.xlane.xlu0 %292 }
 0x30c   :  { %v297_v3 = vmul.f32 -0.5, %v293_v2 }
 0x30e   :  { %v298_v4 = vsel %vm296_vm2, %v297_v3, %v281_v56 }
 0x30f   :  { %299 = vst [vmem:[%s626_s4] sm:$0xff] %v298_v4 }

</bundles_post_ra>
